<compile_context>
chip_gen: v7x
topology: tpu7x:2x2x1
jax: 0.10.0
libtpu: 0.0.40
codegen_flags: <defaults>
</compile_context>

<pallas_src>
import math

import jax
import jax.numpy as jnp
from jax.experimental import pallas as pl
from jax.experimental.pallas import tpu as pltpu

LANE = 128
_DEFAULT_TILE_CAP = 32 * 1024  # lanes per grid step; ~10 MiB VMEM for this model


def _round_up(n: int, m: int) -> int:
    return (n + m - 1) // m * m


def make_mlp_kernel(in_features: int):
    """Fused 3-layer MLP kernel operating in [features, batch] (lane-dense) layout."""
    use_vpu_layer1 = in_features <= 8  # tiny-K contraction -> VPU broadcast FMAs

    def mlp_kernel(xT_ref, w1t_ref, b1_ref, w2t_ref, b2_ref, w3t_ref, b3_ref, oT_ref):
        xT = xT_ref[...]                  # [in_f, Bt]   (lanes = batch)
        w1t = w1t_ref[...]                # [hidden, in_f]

        if use_vpu_layer1:
            # K = in_f contraction as unrolled VPU broadcast multiply-adds:
            # avoids padding a K=2 matmul up to the full MXU depth.
            acc = w1t[:, 0:1] * xT[0:1, :]                    # [hidden, Bt]
            for k in range(1, in_features):
                acc = acc + w1t[:, k:k + 1] * xT[k:k + 1, :]
            h1 = acc + b1_ref[...]                            # bias [hidden, 1] lane-broadcast
        else:
            h1 = jnp.dot(w1t, xT, preferred_element_type=jnp.float32) + b1_ref[...]
        h1 = jnp.maximum(h1, 0.0)                             # ReLU (lane-dense VPU)

        h2 = jnp.dot(w2t_ref[...], h1,
                     preferred_element_type=jnp.float32) + b2_ref[...]
        h2 = jnp.maximum(h2, 0.0)                             # ReLU

        out = jnp.dot(w3t_ref[...], h2,
                      preferred_element_type=jnp.float32) + b3_ref[...]
        oT_ref[...] = out.astype(oT_ref.dtype)                # [out_f, Bt], unmasked store

    return mlp_kernel


def _pick_batch_tile(b_pad: int, tile_cap: int) -> int:
    if b_pad <= tile_cap:
        return b_pad                      # single grid step for small/moderate B
    # >= 2 grid steps so the "parallel" batch axis shards across both
    # TensorCores on v7x; tile as large as allowed to amortize step overhead.
    return min(tile_cap, _round_up(pl.cdiv(b_pad, 2), LANE))


def _vmem_limit_bytes(batch_tile: int, in_f: int, hidden: int, out_f: int) -> int:
    # Double-buffered in/out lane tiles + the two [hidden, Bt] intermediates,
    # 2x headroom, capped below v7x's 64 MiB per-TC physical VMEM.
    per_step = 4 * batch_tile * (2 * in_f + 2 * out_f + 2 * hidden)
    return int(min(max(2 * per_step, 16 << 20), 48 << 20))


def clustering_model_forward_fbatch(xT, params, *, batch_tile=None):
    """Core forward in lane-dense layout: xT [in_f, B] f32 -> [out_f, B] f32."""
    in_f, B = xT.shape
    hidden = params["w1t"].shape[0]
    out_f = params["w3t"].shape[0]

    b_pad = max(_round_up(B, LANE), LANE)
    if batch_tile is None:
        batch_tile = _pick_batch_tile(b_pad, _DEFAULT_TILE_CAP)
    else:
        batch_tile = max(LANE, _round_up(int(batch_tile), LANE))
    b_pad = _round_up(b_pad, batch_tile)

    if b_pad != B:                        # pad instead of asserting divisibility
        xT = jnp.pad(xT, ((0, 0), (0, b_pad - B)))

    grid = (b_pad // batch_tile,)
    # Weights/biases are small and constant-indexed: resident across all steps.
    resident = lambda shape: pl.BlockSpec(shape, lambda i: (0, 0))

    outT = pl.pallas_call(
        make_mlp_kernel(in_f),
        out_shape=jax.ShapeDtypeStruct((out_f, b_pad), jnp.float32),
        grid=grid,
        in_specs=[
            pl.BlockSpec((in_f, batch_tile), lambda i: (0, i)),  # x^T lane tile
            resident((hidden, in_f)),     # w1^T
            resident((hidden, 1)),        # b1
            resident((hidden, hidden)),   # w2^T
            resident((hidden, 1)),        # b2
            resident((out_f, hidden)),    # w3^T
            resident((out_f, 1)),         # b3
        ],
        out_specs=pl.BlockSpec((out_f, batch_tile), lambda i: (0, i)),
        compiler_params=pltpu.CompilerParams(
            dimension_semantics=("parallel",),   # lane tiles of batch are independent
            vmem_limit_bytes=_vmem_limit_bytes(batch_tile, in_f, hidden, out_f),
        ),
    )(xT, params["w1t"], params["b1"], params["w2t"], params["b2"],
      params["w3t"], params["b3"])

    return outT if b_pad == B else outT[:, :B]


def clustering_model_forward(x, params, *, batch_tile=None):
    """Standard nn.Module layout: x [B, in_f] -> [B, out_f].

    The two layout-plumbing transposes live here only; large-B pipelines should
    call `clustering_model_forward_fbatch` directly with activations kept in
    [features, B] layout to avoid the extra x.T / out.T HBM traffic.
    """
    return clustering_model_forward_fbatch(x.T, params, batch_tile=batch_tile).T


def init_params(key, in_features, out_features, hidden_units):
    """Deterministic init mimicking nn.Linear's U(-1/sqrt(fan_in), 1/sqrt(fan_in)).

    Weights stored transposed as [fan_out, fan_in]; biases as [fan_out, 1].
    """
    def linear_init(k, fan_in, fan_out):
        kw, kb = jax.random.split(k)
        bound = 1.0 / math.sqrt(fan_in)
        wT = jax.random.uniform(kw, (fan_out, fan_in), jnp.float32, -bound, bound)
        b = jax.random.uniform(kb, (fan_out, 1), jnp.float32, -bound, bound)
        return wT, b

    k1, k2, k3 = jax.random.split(key, 3)
    w1t, b1 = linear_init(k1, in_features, hidden_units)
    w2t, b2 = linear_init(k2, hidden_units, hidden_units)
    w3t, b3 = linear_init(k3, hidden_units, out_features)
    return {"w1t": w1t, "b1": b1, "w2t": w2t, "b2": b2, "w3t": w3t, "b3": b3}


def reference_forward(x, p):
    h1 = jnp.maximum(x @ p["w1t"].T + p["b1"].T, 0.0)
    h2 = jnp.maximum(h1 @ p["w2t"].T + p["b2"].T, 0.0)
    return h2 @ p["w3t"].T + p["b3"].T


if __name__ == "__main__":
    # Blob-style multi-class setup: 2 input features, 4 classes, 32 hidden units.
    IN_FEATURES, OUT_FEATURES, HIDDEN_UNITS = 2, 4, 32

    key = jax.random.PRNGKey(0)
    kx, kp = jax.random.split(key)
    params = init_params(kp, IN_FEATURES, OUT_FEATURES, HIDDEN_UNITS)

    # (batch, forced batch_tile): single-step, ragged/padded batch, multi-step grid.
    for batch, tile in ((128, None), (200, None), (256, 128)):
        x = jax.random.normal(kx, (batch, IN_FEATURES), dtype=jnp.float32)
        out = clustering_model_forward(x, params, batch_tile=tile)
        out = jax.block_until_ready(out)
        ref = reference_forward(x, params)
        assert out.shape == (batch, OUT_FEATURES)
        assert jnp.allclose(out, ref, atol=1e-5, rtol=1e-5), (batch, tile)

    print("KERNEL_OK")
</pallas_src>

<mosaic_0001>
module attributes {stable_mosaic.version = 11 : i64} {
  func.func @mlp_kernel(%arg0: i32, %arg1: memref<2x128xf32, #tpu.memory_space<vmem>>, %arg2: memref<32x2xf32, #tpu.memory_space<vmem>>, %arg3: memref<32x1xf32, #tpu.memory_space<vmem>>, %arg4: memref<32x32xf32, #tpu.memory_space<vmem>>, %arg5: memref<32x1xf32, #tpu.memory_space<vmem>>, %arg6: memref<4x32xf32, #tpu.memory_space<vmem>>, %arg7: memref<4x1xf32, #tpu.memory_space<vmem>>, %arg8: memref<4x128xf32, #tpu.memory_space<vmem>>) attributes {dimension_semantics = [#tpu.dimension_semantics<parallel>], iteration_bounds = array<i64: 1>, scalar_prefetch = 0 : i64, scratch_operands = 0 : i64, tpu.core_type = #tpu.core_type<tc>, window_params = [{transform_indices = @transform_0, window_bounds = array<i64: 2, 128>}, {pipeline_mode = #tpu.pipeline_mode<synchronous>, transform_indices = @transform_1, window_bounds = array<i64: 32, 2>}, {pipeline_mode = #tpu.pipeline_mode<synchronous>, transform_indices = @transform_2, window_bounds = array<i64: 32, 1>}, {pipeline_mode = #tpu.pipeline_mode<synchronous>, transform_indices = @transform_3, window_bounds = array<i64: 32, 32>}, {pipeline_mode = #tpu.pipeline_mode<synchronous>, transform_indices = @transform_4, window_bounds = array<i64: 32, 1>}, {pipeline_mode = #tpu.pipeline_mode<synchronous>, transform_indices = @transform_5, window_bounds = array<i64: 4, 32>}, {pipeline_mode = #tpu.pipeline_mode<synchronous>, transform_indices = @transform_6, window_bounds = array<i64: 4, 1>}, {transform_indices = @transform_7, window_bounds = array<i64: 4, 128>}]} {
    %c0 = arith.constant 0 : index
    %c0_0 = arith.constant 0 : index
    %0 = vector.load %arg1[%c0, %c0_0] : memref<2x128xf32, #tpu.memory_space<vmem>>, vector<2x128xf32>
    %c0_1 = arith.constant 0 : index
    %c0_2 = arith.constant 0 : index
    %1 = vector.load %arg2[%c0_1, %c0_2] : memref<32x2xf32, #tpu.memory_space<vmem>>, vector<32x2xf32>
    %2 = vector.extract_strided_slice %1 {offsets = [0, 0], sizes = [32, 1], strides = [1, 1]} : vector<32x2xf32> to vector<32x1xf32>
    %3 = vector.extract_strided_slice %0 {offsets = [0, 0], sizes = [1, 128], strides = [1, 1]} : vector<2x128xf32> to vector<1x128xf32>
    %4 = vector.broadcast %2 : vector<32x1xf32> to vector<32x128xf32>
    %5 = vector.broadcast %3 : vector<1x128xf32> to vector<32x128xf32>
    %6 = arith.mulf %4, %5 : vector<32x128xf32>
    %7 = vector.extract_strided_slice %1 {offsets = [0, 1], sizes = [32, 1], strides = [1, 1]} : vector<32x2xf32> to vector<32x1xf32>
    %8 = vector.extract_strided_slice %0 {offsets = [1, 0], sizes = [1, 128], strides = [1, 1]} : vector<2x128xf32> to vector<1x128xf32>
    %9 = vector.broadcast %7 : vector<32x1xf32> to vector<32x128xf32>
    %10 = vector.broadcast %8 : vector<1x128xf32> to vector<32x128xf32>
    %11 = arith.mulf %9, %10 : vector<32x128xf32>
    %12 = arith.addf %6, %11 : vector<32x128xf32>
    %c0_3 = arith.constant 0 : index
    %c0_4 = arith.constant 0 : index
    %13 = vector.load %arg3[%c0_3, %c0_4] : memref<32x1xf32, #tpu.memory_space<vmem>>, vector<32x1xf32>
    %14 = vector.broadcast %13 : vector<32x1xf32> to vector<32x128xf32>
    %15 = arith.addf %12, %14 : vector<32x128xf32>
    %cst = arith.constant 0.000000e+00 : f32
    %16 = vector.broadcast %cst : f32 to vector<32x128xf32>
    %17 = arith.maximumf %15, %16 : vector<32x128xf32>
    %c0_5 = arith.constant 0 : index
    %c0_6 = arith.constant 0 : index
    %18 = vector.load %arg4[%c0_5, %c0_6] : memref<32x32xf32, #tpu.memory_space<vmem>>, vector<32x32xf32>
    %cst_7 = arith.constant dense<0.000000e+00> : vector<32x128xf32>
    %19 = tpu.matmul %18, %17, %cst_7 {dimension_numbers = #tpu.dot_dimension_numbers<[1], [0], [0], [1], [0, 0, 1, 1], [], []>} : vector<32x32xf32>, vector<32x128xf32>, vector<32x128xf32> -> vector<32x128xf32>
    %c0_8 = arith.constant 0 : index
    %c0_9 = arith.constant 0 : index
    %20 = vector.load %arg5[%c0_8, %c0_9] : memref<32x1xf32, #tpu.memory_space<vmem>>, vector<32x1xf32>
    %21 = vector.broadcast %20 : vector<32x1xf32> to vector<32x128xf32>
    %22 = arith.addf %19, %21 : vector<32x128xf32>
    %cst_10 = arith.constant 0.000000e+00 : f32
    %23 = vector.broadcast %cst_10 : f32 to vector<32x128xf32>
    %24 = arith.maximumf %22, %23 : vector<32x128xf32>
    %c0_11 = arith.constant 0 : index
    %c0_12 = arith.constant 0 : index
    %25 = vector.load %arg6[%c0_11, %c0_12] : memref<4x32xf32, #tpu.memory_space<vmem>>, vector<4x32xf32>
    %cst_13 = arith.constant dense<0.000000e+00> : vector<4x128xf32>
    %26 = tpu.matmul %25, %24, %cst_13 {dimension_numbers = #tpu.dot_dimension_numbers<[1], [0], [0], [1], [0, 0, 1, 1], [], []>} : vector<4x32xf32>, vector<32x128xf32>, vector<4x128xf32> -> vector<4x128xf32>
    %c0_14 = arith.constant 0 : index
    %c0_15 = arith.constant 0 : index
    %27 = vector.load %arg7[%c0_14, %c0_15] : memref<4x1xf32, #tpu.memory_space<vmem>>, vector<4x1xf32>
    %28 = vector.broadcast %27 : vector<4x1xf32> to vector<4x128xf32>
    %29 = arith.addf %26, %28 : vector<4x128xf32>
    %c0_16 = arith.constant 0 : index
    %c0_17 = arith.constant 0 : index
    %30 = vector.load %arg8[%c0_16, %c0_17] : memref<4x128xf32, #tpu.memory_space<vmem>>, vector<4x128xf32>
    tpu.vector_store %arg8[%c0_16, %c0_17], %29 {strides = array<i32>} : memref<4x128xf32, #tpu.memory_space<vmem>>, vector<4x128xf32>,
    return
  }
  func.func @transform_0(%arg0: i32) -> (i32, i32) {
    %c0_i32 = arith.constant 0 : i32
    %c0_i32_0 = arith.constant 0 : i32
    return %c0_i32, %arg0 : i32, i32
  }
  func.func @transform_1(%arg0: i32) -> (i32, i32) {
    %c0_i32 = arith.constant 0 : i32
    %c0_i32_0 = arith.constant 0 : i32
    %c0_i32_1 = arith.constant 0 : i32
    return %c0_i32, %c0_i32_0 : i32, i32
  }
  func.func @transform_2(%arg0: i32) -> (i32, i32) {
    %c0_i32 = arith.constant 0 : i32
    %c0_i32_0 = arith.constant 0 : i32
    %c0_i32_1 = arith.constant 0 : i32
    return %c0_i32, %c0_i32_0 : i32, i32
  }
  func.func @transform_3(%arg0: i32) -> (i32, i32) {
    %c0_i32 = arith.constant 0 : i32
    %c0_i32_0 = arith.constant 0 : i32
    %c0_i32_1 = arith.constant 0 : i32
    return %c0_i32, %c0_i32_0 : i32, i32
  }
  func.func @transform_4(%arg0: i32) -> (i32, i32) {
    %c0_i32 = arith.constant 0 : i32
    %c0_i32_0 = arith.constant 0 : i32
    %c0_i32_1 = arith.constant 0 : i32
    return %c0_i32, %c0_i32_0 : i32, i32
  }
  func.func @transform_5(%arg0: i32) -> (i32, i32) {
    %c0_i32 = arith.constant 0 : i32
    %c0_i32_0 = arith.constant 0 : i32
    %c0_i32_1 = arith.constant 0 : i32
    return %c0_i32, %c0_i32_0 : i32, i32
  }
  func.func @transform_6(%arg0: i32) -> (i32, i32) {
    %c0_i32 = arith.constant 0 : i32
    %c0_i32_0 = arith.constant 0 : i32
    %c0_i32_1 = arith.constant 0 : i32
    return %c0_i32, %c0_i32_0 : i32, i32
  }
  func.func @transform_7(%arg0: i32) -> (i32, i32) {
    %c0_i32 = arith.constant 0 : i32
    %c0_i32_0 = arith.constant 0 : i32
    return %c0_i32, %arg0 : i32, i32
  }
}

</mosaic_0001>

<bundles_post_ra>
// kernel: tpu_custom_call.1
= control target key start
LH: loop header
LB: loop body
LE: loop exit
PB: predicated region body
PF: predicated region fallthrough
CT: control target
= control target key end

     0   :  { %v438_v2 = vmov 1   ;;  %s558_s0 = inlined_call_operand.vmem [shape: f32[2,128], index: 0, kind: input, shape index: {}]   ;;  %s559_s1 = inlined_call_operand.vmem [shape: f32[32,2], index: 1, kind: input, shape index: {}]   ;;  %s560_s2 = inlined_call_operand.vmem [shape: f32[32,1], index: 2, kind: input, shape index: {}]   ;;  %s561_s3 = inlined_call_operand.vmem [shape: f32[32,32], index: 3, kind: input, shape index: {}]   ;;  %s562_s4 = inlined_call_operand.vmem [shape: f32[32,1], index: 4, kind: input, shape index: {}]   ;;  %s563_s5 = inlined_call_operand.vmem [shape: f32[4,32], index: 5, kind: input, shape index: {}]   ;;  %s564_s6 = inlined_call_operand.vmem [shape: f32[4,1], index: 6, kind: input, shape index: {}]   ;;  %s565_s7 = inlined_call_operand.hbm [shape: f32[4,128], index: 7, kind: output, shape index: {}]  }
   0x1   :  { %v30_v0 = vld [vmem:[%s559_s1 + $0x10] sm:$0xff]  ;;  %v28_v1 = vld [vmem:[%s559_s1] sm:$0xff]  ;;  %410 = vset.pattern.permute.xlu0 %v438_v2  ;;  %408 = vset.pattern.permute.xlu1 %v438_v2  ;;  %v29_v3 = vld [vmem:[%s559_s1 + $0x8] sm:$0xff] }
   0x2   :  { %69 = vperm.xlu0 %410, %v30_v0   ;;  %61 = vperm.xlu1 %408, %v28_v1  }
   0x3   :  { %12 = vsyncpa [#allocation3], 0  ;;  %v439_v4 = vmov 0   ;;  %v31_v5 = vld [vmem:[%s559_s1 + $0x18] sm:$0xff]  ;;  %v89_v6 = vld [vmem:[%s560_s2 + $0x8] sm:$0xff]  ;;  %vm148_vm0 = vcmask 261120   ;;  %v52_v16 = vlaneseq }
   0x4   :  { %v88_v7 = vld [vmem:[%s560_s2] sm:$0xff]  ;;  %v90_v9 = vld [vmem:[%s560_s2 + $0x10] sm:$0xff]  ;;  %v91_v11 = vld [vmem:[%s560_s2 + $0x18] sm:$0xff]  ;;  %v440_v60 = vmov 0.0|0.0   ;;  %vm441_vm1 = vmmov 0   ;;  %v442_v61 = vmov 0.0  }
   0x5   :  { %v124_v8 = vld [vmem:[%s562_s4] sm:$0xff]  ;;  %v126_v10 = vld [vmem:[%s562_s4 + $0x10] sm:$0xff]  ;;  %v125_v13 = vld [vmem:[%s562_s4 + $0x8] sm:$0xff]  ;;  %v53_v19 = vshrl.u32 %v52_v16, 7  ;;  %396 = vmatprep.subr.bf16.mxu1 %v440_v60  ;;  %385 = vmatprep.mubr.msk.f32.mxu1 %vm441_vm1, %v442_v61  ;;  %s443_s10 = smov [#allocation2]  }
   0x6   :  { %411 = vset.pattern.permute.xlu0 %v439_v4  ;;  %65 = vperm.xlu1 %408, %v29_v3   ;;  %v251_v12 = vld [vmem:[%s564_s6] sm:$0xf]  ;;  %v127_v14 = vld [vmem:[%s562_s4 + $0x18] sm:$0xff]  ;;  %v121_v57 = vld [vmem:[%s561_s3 + $0x8] sm:$0xff]  ;;  %s337_s11 = sshll.u32 %s443_s10, 4  ;;  %s338_s11 = int_to_ptr.vmem [resolvable:$true] %s337_s11 }
   0x7   :  { %34 = vperm.xlu0 %411, %v28_v1   ;;  %v120_v15 = vld [vmem:[%s561_s3] sm:$0xff]  ;;  %v54_v22 = vsub.s32 0, %v53_v19  ;;  %v78_v23 = vsub.s32 1, %v53_v19  ;;  %v122_v58 = vld [vmem:[%s561_s3 + $0x10] sm:$0xff]  ;;  %v123_v59 = vld [vmem:[%s561_s3 + $0x18] sm:$0xff]  ;;  %s414_s12 = scalar_lea.vmem %s338_s11, 64  ;;  %p419_p1 = scmp.lt.s32.totalorder %s338_s11, %s338_s11 }
   0x8   :  { %371 = vmatprep.mubr.msk.f32.mxu0 %vm148_vm0, %v120_v15  ;;  %v27_v24 = vld [vmem:[%s558_s0] sm:$0x3]  ;;  %p415_p0 = scmp.ne.s32.totalorder %s338_s11, %s414_s12  ;;  %p420_p2 = scmp.lt.s32.totalorder %s414_s12, %s414_s12 }
   0x9   :  { %v55_v27 = vrot.slane %v27_v24, %v54_v22  ;;  %v79_v28 = vrot.slane %v27_v24, %v78_v23  ;;  %v250_v16 = vld [vmem:[%s563_s5] sm:$0xf] }
   0xa   :  { %409 = vset.pattern.permute.xlu1 %v439_v4  ;;  %p421_p3 = por %p420_p2, %p419_p1 }
   0xb   :  { %39 = vperm.xlu0 %411, %v29_v3   ;;  %49 = vperm.xlu1 %409, %v31_v5  }
   0xc   :  { %p422_p4 = pnand %p421_p3, %p415_p0 }
   0xf   :  { %44 = vperm.xlu0 %411, %v30_v0   ;;  %412 = vset.pattern.permute.xlu1 %v438_v2 }
  0x10   :  { %73 = vperm.xlu1 %412, %v31_v5  }
  0x13   :  { %99 = vperm.xlu0 %411, %v89_v6  }
  0x14   :  { %413 = vset.pattern.permute.xlu1 %v439_v4 }
  0x15   :  { %94 = vperm.xlu1 %413, %v88_v7  }
  0x17   :  { %130 = vperm.xlu0 %411, %v124_v8  }
  0x19   :  { %104 = vperm.xlu1 %413, %v90_v9  }
  0x1b   :  { %140 = vperm.xlu0 %411, %v126_v10  }
  0x1d   :  { %109 = vperm.xlu1 %413, %v91_v11  }
  0x1f   :  { %254 = vperm.xlu0 %411, %v251_v12  }
  0x21   :  { %135 = vperm.xlu1 %413, %v125_v13  }
  0x25   :  { %145 = vperm.xlu1 %413, %v127_v14  }
  0x81   :  { %v62_v17 = vpop.permute.xlu1 %61  ;;  %v70_v18 = vpop.permute.xlu0 %69 }
  0x82   :  { %v80_v34 = vmul.f32 %v79_v28, %v62_v17  ;;  %v82_v42 = vmul.f32 %v79_v28, %v70_v18 }
  0x85   :  { %v66_v20 = vpop.permute.xlu1 %65 }
  0x86   :  { %v35_v21 = vpop.permute.xlu0 %34  ;;  %v81_v31 = vmul.f32 %v79_v28, %v66_v20 }
  0x87   :  { %v56_v32 = vmul.f32 %v55_v27, %v35_v21 }
  0x89   :  { %v84_v38 = vadd.f32 %v80_v34, %v56_v32 }
  0x8a   :  { %v40_v25 = vpop.permute.xlu0 %39  ;;  %v50_v26 = vpop.permute.xlu1 %49 }
  0x8b   :  { %v57_v29 = vmul.f32 %v55_v27, %v40_v25  ;;  %v59_v47 = vmul.f32 %v55_v27, %v50_v26 }
  0x8d   :  { %v85_v35 = vadd.f32 %v81_v31, %v57_v29 }
  0x8e   :  { %v45_v30 = vpop.permute.xlu0 %44 }
  0x8f   :  { %v74_v33 = vpop.permute.xlu1 %73  ;;  %v58_v40 = vmul.f32 %v55_v27, %v45_v30 }
  0x90   :  { %v83_v43 = vmul.f32 %v79_v28, %v74_v33 }
  0x91   :  { %v86_v48 = vadd.f32 %v82_v42, %v58_v40 }
  0x92   :  { %v100_v36 = vpop.permute.xlu0 %99  ;;  %v87_v51 = vadd.f32 %v83_v43, %v59_v47 }
  0x93   :  { %v113_v37 = vadd.f32 %v100_v36, %v85_v35 }
  0x94   :  { %v95_v39 = vpop.permute.xlu1 %94 }
  0x95   :  { %v112_v41 = vadd.f32 %v95_v39, %v84_v38  ;;  %v117_v44 = vmax.f32 %v113_v37, 0.0 }
  0x96   :  { %v131_v63 = vpop.permute.xlu0 %130 }
  0x97   :  { %v116_v45 = vmax.f32 %v112_v41, 0.0 }
  0x98   :  { %v105_v46 = vpop.permute.xlu1 %104 }
  0x99   :  { %v388_v49 = vpack.c.bf16 %v117_v44, %v116_v45  ;;  %v114_v50 = vadd.f32 %v105_v46, %v86_v48 }
  0x9a   :  { %v141_v8 = vpop.permute.xlu0 %140 }
  0x9b   :  { %389 = vmatprep.subr.bf16.mxu0 %v388_v49  ;;  %v118_v54 = vmax.f32 %v114_v50, 0.0 }
  0x9c   :  { %v110_v52 = vpop.permute.xlu1 %109  ;;  %391 = vmatpush3.bf16.msra.mxu0 %v388_v49 }
  0x9d   :  { %v115_v53 = vadd.f32 %v110_v52, %v87_v51 }
  0x9e   :  { %v255_v17 = vpop.permute.xlu0 %254 }
  0x9f   :  { %v119_v55 = vmax.f32 %v115_v53, 0.0 }
  0xa0   :  { %v136_v62 = vpop.permute.xlu1 %135 }
  0xa1   :  { %v392_v56 = vpack.c.bf16 %v119_v55, %v118_v54 }
  0xa3   :  { %393 = vmatprep.subr.bf16.mxu0 %v392_v56 }
  0xa4   :  { %395 = vmatpush3.bf16.msra.mxu0 %v392_v56  ;;  %v146_v5 = vpop.permute.xlu1 %145 }
  0xa7   :  { %372 = vmatmul.mubr.msk.f32.vlgmr.msra.gmra.mrb[0].mxu0 %vm148_vm0, %v121_v57 }
  0xa8   :  { %374 = vmatprep.mubr.msk.f32.mxu0 %vm148_vm0, %v122_v58 }
  0xab   :  { %375 = vmatmul.mubr.msk.f32.gmra.mrb[2].mxu0 %vm148_vm0, %v123_v59 }
 0x17a   :  { %v373_v0 = vpop.f32.mrb[0].mxu0 }
 0x17b   :  { %v233_v1 = vadd.f32 %v373_v0, %v136_v62  ;;  %v227_v2 = vpop.f32.mrb[1].mxu0 }
 0x17c   :  { %v228_v3 = vadd.f32 %v227_v2, %v131_v63 }
 0x17d   :  { %v247_v4 = vmax.f32 %v233_v1, 0.0 }
 0x17e   :  { %v246_v6 = vmax.f32 %v228_v3, 0.0  ;;  %v376_v7 = vpop.f32.mrb[2].mxu0 }
 0x17f   :  { %v243_v9 = vadd.f32 %v376_v7, %v146_v5  ;;  %v237_v10 = vpop.f32.mrb[3].mxu0 }
 0x180   :  { %v238_v11 = vadd.f32 %v237_v10, %v141_v8  ;;  %v397_v12 = vpack.c.bf16 %v247_v4, %v246_v6 }
 0x181   :  { %v249_v13 = vmax.f32 %v243_v9, 0.0 }
 0x182   :  { %v248_v14 = vmax.f32 %v238_v11, 0.0  ;;  %398 = vmatpush3.bf16.msra.mxu1 %v397_v12 }
 0x183   :  { %399 = vmatprep.subr.bf16.mxu1 %v440_v60 }
 0x184   :  { %v400_v15 = vpack.c.bf16 %v249_v13, %v248_v14 }
 0x186   :  { %401 = vmatpush3.bf16.msra.mxu1 %v400_v15 }
 0x189   :  { %386 = vmatmul.mubr.msk.f32.vlgmr.msra.gmra.mrb[0].mxu1 %vm148_vm0, %v250_v16 }
 0x25c   :  { %v326_v18 = vpop.f32.mrb[0].mxu1 }
 0x25d   :  { %v327_v19 = vadd.f32 %v326_v18, %v255_v17  ;;  %v387_v20 = vpop.f32.mrb[1].mxu1 }
 0x25f   :  { %330 = vst [vmem:[#allocation2] sm:$0xf] %v327_v19 }
 0x260   :  { %425 = shalt.err (!%p422_p4)
}
 0x261   :  { %s426_s5 = scalar_lea.hbm %s565_s7, 64 }
 0x262   :  { %p427_p5 = scmp.ne.s32.totalorder %s565_s7, %s426_s5  ;;  %p430_p6 = scmp.lt.u32.totalorder %s426_s5, %s565_s7 }
 0x264   :  { %p432_p7 = pnand %p430_p6, %p427_p5 }
 0x266   :  { %435 = shalt.err (!%p432_p7)
}
 0x267   :  { %340 = dma.vmem_to_hbm [thread:$0]  %s338_s11, 64, %s565_s7, [#allocation3]  }
 0x268   :  { %436 = dma.done.wait [#allocation3], 64  }
 0x269   :  { %437 = vsyncadd [#allocation3], 4294967232 }
 0x26a   :  { %344 = vsyncpa [#allocation3], 1 }

</bundles_post_ra>
